<compile_context>
chip_gen: v7x
topology: tpu7x:2x2x1
jax: 0.10.0
libtpu: 0.0.40
codegen_flags: <defaults>
</compile_context>

<pallas_src>
import functools

import jax
import jax.numpy as jnp
from jax.experimental import pallas as pl
from jax.experimental.pallas import tpu as pltpu


def _inferential_kernel(ha_ref, hb_ref, w_ref, p_ref, wba_ref, wbb_ref,
                        wbc_ref, bb_ref, g_ref, beta_ref, o_ref, *, mxu_dtype):
    B, tS, H = ha_ref.shape

    # Upcast streamed activations (possibly bf16 in HBM) for f32 VPU/EUP math.
    ha = ha_ref[...].astype(jnp.float32)                 # (B, tS, H)
    hb = hb_ref[...].astype(jnp.float32)

    # e = softmax(P(tanh(W(ha * hb))), dim=0)
    # reshape is a leading-dim merge (tS % 8 == 0) -> layout-preserving.
    x = (ha * hb).reshape(B * tS, H)
    t = jnp.tanh(jnp.dot(x.astype(mxu_dtype), w_ref[...],
                         preferred_element_type=jnp.float32))     # (B*tS, K)

    # t @ P with P a single output column: broadcast-mul + lane reduce instead
    # of an N=1 MXU dot.
    logits = jnp.sum(t * p_ref[...], axis=-1, keepdims=True)      # (B*tS, 1)
    logits = logits.reshape(B, tS, 1)

    # F.softmax with implicit dim on a 3-D tensor -> softmax over dim 0.
    # Exact reciprocal: only B*tS scalars, so exactness is free.
    m = jnp.max(logits, axis=0, keepdims=True)
    ex = jnp.exp(logits - m)
    e = ex / jnp.sum(ex, axis=0, keepdims=True)                   # (B, tS, 1)

    # hb_d = ha * e ;  cat([hb, hb_d, hb-hb_d, hb*hb_d]) @ Wb + b folded to
    #   hb @ (W0+W2) + hb_d @ (W1-W2) + (hb*hb_d) @ W3 + b
    hb_d = ha * e
    hb2 = hb.reshape(B * tS, H)
    hbd2 = hb_d.reshape(B * tS, H)
    prod2 = (hb * hb_d).reshape(B * tS, H)
    z = (jnp.dot(hb2.astype(mxu_dtype), wba_ref[...],
                 preferred_element_type=jnp.float32)
         + jnp.dot(hbd2.astype(mxu_dtype), wbb_ref[...],
                   preferred_element_type=jnp.float32)
         + jnp.dot(prod2.astype(mxu_dtype), wbc_ref[...],
                   preferred_element_type=jnp.float32)
         + bb_ref[...])                                           # (B*tS, H)

    # LayerNorm(relu(z)) -- biased variance, eps=1e-5.
    r = jnp.maximum(z, 0.0)
    mu = jnp.mean(r, axis=-1, keepdims=True)
    var = jnp.mean((r - mu) ** 2, axis=-1, keepdims=True)
    y = (r - mu) * jax.lax.rsqrt(var + 1e-5)
    y = y * g_ref[...] + beta_ref[...]

    o_ref[...] = y.reshape(B, tS, H).astype(o_ref.dtype)


def _round_up(x, m):
    return ((x + m - 1) // m) * m


def _vmem_capacity_bytes():
    try:
        return int(pltpu.get_tpu_info().vmem_capacity_bytes)
    except Exception:
        return 64 * 1024 * 1024     # conservative fallback (v7x-sized VMEM)


def _choose_seq_tile(S, B, H, K, act_bytes, out_bytes, seq_tile):
    """Pick tS (multiple of 8).  The B axis can never be tiled (dim-0 softmax),
    so the per-row budget covers the full batch: 2 double-buffered inputs,
    double-buffered output, and ~6 live f32 (B*tS, H) intermediates."""
    per_row = B * H * (2 * 2 * act_bytes + 2 * out_bytes + 6 * 4) + 2 * B * K * 4
    if seq_tile is None:
        budget = int(0.6 * _vmem_capacity_bytes())
        seq_tile = max(8, budget // max(per_row, 1))
    t = min(int(seq_tile), _round_up(S, 8))
    t = max(8, (t // 8) * 8)
    # Keep at least 2 grid steps when possible so v7x's two TensorCores both
    # get work under dimension_semantics=("parallel",).
    if _round_up(S, t) // t < 2 and t > 8:
        t = max(8, (t // 2 // 8) * 8)
    return t, _round_up(S, t), per_row


def inferential_forward(ha, hb, params, *, seq_tile=None,
                        mxu_dtype=jnp.bfloat16, act_dtype=None,
                        out_dtype=jnp.float32):
    """Fused forward pass; one pallas_call, gridded over the sequence axis."""
    B, S, H = ha.shape
    K = params["w_t"].shape[1]

    act_dtype = ha.dtype if act_dtype is None else act_dtype
    act_bytes = jnp.dtype(act_dtype).itemsize
    out_bytes = jnp.dtype(out_dtype).itemsize
    mxu_bytes = jnp.dtype(mxu_dtype).itemsize

    # Fold the 4H->H projection: rows [0:H], [H:2H], [2H:3H], [3H:4H] of Wb^T
    # multiply hb, hb_d, hb-hb_d, hb*hb_d respectively.
    wb_t = params["wb_t"].astype(jnp.float32)                 # (4H, H)
    w0, w1, w2, w3 = (wb_t[0:H], wb_t[H:2 * H],
                      wb_t[2 * H:3 * H], wb_t[3 * H:4 * H])
    wba = (w0 + w2).astype(mxu_dtype)
    wbb = (w1 - w2).astype(mxu_dtype)
    wbc = w3.astype(mxu_dtype)
    w = params["w_t"].astype(mxu_dtype)                       # (H, K)
    p_row = params["p_t"].reshape(1, K).astype(jnp.float32)   # (K,1) -> (1,K)
    bb = params["bb"].reshape(1, H).astype(jnp.float32)
    gamma = params["gamma"].reshape(1, H).astype(jnp.float32)
    beta = params["beta"].reshape(1, H).astype(jnp.float32)

    tS, S_pad, per_row = _choose_seq_tile(S, B, H, K, act_bytes, out_bytes,
                                          seq_tile)

    # Explicit scoped-VMEM budget (default scoped limits are 16/32 MiB).
    cap = _vmem_capacity_bytes()
    weight_bytes = (3 * H * H + H * K) * mxu_bytes + (3 * H + K) * 4
    vmem_limit = int(min(0.9 * cap,
                         max(32 * 2 ** 20, 1.5 * (per_row * tS + weight_bytes))))

    # Pad S wrapper-side to a multiple of the tile (padded rows are fully
    # independent -- softmax is over B, LayerNorm per row -- and sliced off).
    if S_pad != S:
        pad = [(0, 0), (0, S_pad - S), (0, 0)]
        ha = jnp.pad(ha, pad)
        hb = jnp.pad(hb, pad)
    ha = ha.astype(act_dtype)
    hb = hb.astype(act_dtype)

    grid = (S_pad // tS,)
    act_spec = pl.BlockSpec((B, tS, H), lambda i: (0, i, 0))

    def const(a):
        # Constant index_map -> block identical for every grid step, so it is
        # never re-DMA'd; Buffered(1) drops the useless second pipeline buffer
        # (VMEM headroom on v7x's 64 MiB).
        return pl.BlockSpec(a.shape, lambda i: (0,) * a.ndim,
                            pipeline_mode=pl.Buffered(1))

    kernel = functools.partial(_inferential_kernel, mxu_dtype=mxu_dtype)
    out = pl.pallas_call(
        kernel,
        out_shape=jax.ShapeDtypeStruct((B, S_pad, H), out_dtype),
        grid=grid,
        in_specs=[act_spec, act_spec,
                  const(w), const(p_row),
                  const(wba), const(wbb), const(wbc),
                  const(bb), const(gamma), const(beta)],
        out_specs=pl.BlockSpec((B, tS, H), lambda i: (0, i, 0)),
        compiler_params=pltpu.CompilerParams(
            dimension_semantics=("parallel",),
            vmem_limit_bytes=vmem_limit),
    )(ha, hb, w, p_row, wba, wbb, wbc, bb, gamma, beta)

    return out[:, :S] if S_pad != S else out


def reference_forward(ha, hb, params):
    """Pure-JAX reference mirroring the PyTorch module (unsplit Wb, concat).
    precision=HIGHEST so the reference itself is not computed in TPU-default
    bf16 matmul precision."""
    hp = jax.lax.Precision.HIGHEST
    x = ha * hb
    t = jnp.tanh(jnp.einsum("bsh,hk->bsk", x, params["w_t"], precision=hp))
    logits = jnp.einsum("bsk,ko->bso", t, params["p_t"], precision=hp)
    e = jax.nn.softmax(logits, axis=0)          # implicit dim=0 for 3-D input
    hb_d = ha * e
    cat = jnp.concatenate([hb, hb_d, hb - hb_d, hb * hb_d], axis=2)
    z = jnp.einsum("bsf,fh->bsh", cat, params["wb_t"], precision=hp) + params["bb"]
    r = jax.nn.relu(z)
    mu = jnp.mean(r, axis=-1, keepdims=True)
    var = jnp.mean((r - mu) ** 2, axis=-1, keepdims=True)
    return ((r - mu) / jnp.sqrt(var + 1e-5)) * params["gamma"] + params["beta"]


if __name__ == "__main__":
    B, S, H, K = 2, 8, 32, 16

    key = jax.random.PRNGKey(0)
    ks = jax.random.split(key, 6)

    # Deterministic synthetic parameters (PyTorch stores Linear weights as
    # (out, in); we pass them pre-transposed so the kernel does plain x @ W).
    params = {
        "w_t":  jax.random.uniform(ks[0], (H, K), jnp.float32, -0.2, 0.2),
        "p_t":  jax.random.uniform(ks[1], (K, 1), jnp.float32, -0.2, 0.2),
        "wb_t": jax.random.uniform(ks[2], (4 * H, H), jnp.float32, -0.1, 0.1),
        "bb":   jax.random.uniform(ks[3], (1, H), jnp.float32, -0.1, 0.1),
        "gamma": jnp.ones((1, H), jnp.float32),
        "beta":  jnp.zeros((1, H), jnp.float32),
    }

    ha = jax.random.normal(ks[4], (B, S, H), jnp.float32)
    hb = jax.random.normal(ks[5], (B, S, H), jnp.float32)

    ref = jax.block_until_ready(reference_forward(ha, hb, params))

    # 1) f32 MXU path: tight numerical check against the reference.
    out_f32 = jax.block_until_ready(
        inferential_forward(ha, hb, params, mxu_dtype=jnp.float32))
    assert out_f32.shape == (B, S, H)
    assert jnp.allclose(out_f32, ref, atol=2e-3, rtol=2e-3), \
        "f32 kernel mismatch vs reference"

    # 2) Production path (defaults): bf16 MXU operands + bf16-streamed
    #    activations, f32 accumulation / elementwise / output.  Loose sanity
    #    check only (bf16 quantization error is expected).
    out_bf16 = jax.block_until_ready(
        inferential_forward(ha, hb, params, act_dtype=jnp.bfloat16))
    assert out_bf16.shape == (B, S, H)
    assert bool(jnp.all(jnp.isfinite(out_bf16)))
    assert float(jnp.mean(jnp.abs(out_bf16 - ref))) < 0.1, \
        "bf16 kernel deviates too much from reference"

    print("KERNEL_OK")
</pallas_src>

<mosaic_0001>
module attributes {stable_mosaic.version = 11 : i64} {
  func.func @_inferential_kernel(%arg0: i32, %arg1: memref<2x8x32xf32, #tpu.memory_space<vmem>>, %arg2: memref<2x8x32xf32, #tpu.memory_space<vmem>>, %arg3: memref<32x16xf32, #tpu.memory_space<vmem>>, %arg4: memref<1x16xf32, #tpu.memory_space<vmem>>, %arg5: memref<32x32xf32, #tpu.memory_space<vmem>>, %arg6: memref<32x32xf32, #tpu.memory_space<vmem>>, %arg7: memref<32x32xf32, #tpu.memory_space<vmem>>, %arg8: memref<1x32xf32, #tpu.memory_space<vmem>>, %arg9: memref<1x32xf32, #tpu.memory_space<vmem>>, %arg10: memref<1x32xf32, #tpu.memory_space<vmem>>, %arg11: memref<2x8x32xf32, #tpu.memory_space<vmem>>) attributes {dimension_semantics = [#tpu.dimension_semantics<parallel>], iteration_bounds = array<i64: 1>, scalar_prefetch = 0 : i64, scratch_operands = 0 : i64, tpu.core_type = #tpu.core_type<tc>, window_params = [{transform_indices = @transform_0, window_bounds = array<i64: 2, 8, 32>}, {transform_indices = @transform_1, window_bounds = array<i64: 2, 8, 32>}, {pipeline_mode = #tpu.pipeline_mode<synchronous>, transform_indices = @transform_2, window_bounds = array<i64: 32, 16>}, {pipeline_mode = #tpu.pipeline_mode<synchronous>, transform_indices = @transform_3, window_bounds = array<i64: 1, 16>}, {pipeline_mode = #tpu.pipeline_mode<synchronous>, transform_indices = @transform_4, window_bounds = array<i64: 32, 32>}, {pipeline_mode = #tpu.pipeline_mode<synchronous>, transform_indices = @transform_5, window_bounds = array<i64: 32, 32>}, {pipeline_mode = #tpu.pipeline_mode<synchronous>, transform_indices = @transform_6, window_bounds = array<i64: 32, 32>}, {pipeline_mode = #tpu.pipeline_mode<synchronous>, transform_indices = @transform_7, window_bounds = array<i64: 1, 32>}, {pipeline_mode = #tpu.pipeline_mode<synchronous>, transform_indices = @transform_8, window_bounds = array<i64: 1, 32>}, {pipeline_mode = #tpu.pipeline_mode<synchronous>, transform_indices = @transform_9, window_bounds = array<i64: 1, 32>}, {transform_indices = @transform_10, window_bounds = array<i64: 2, 8, 32>}]} {
    %c0 = arith.constant 0 : index
    %c0_0 = arith.constant 0 : index
    %c0_1 = arith.constant 0 : index
    %0 = vector.load %arg1[%c0, %c0_0, %c0_1] : memref<2x8x32xf32, #tpu.memory_space<vmem>>, vector<2x8x32xf32>
    %c0_2 = arith.constant 0 : index
    %c0_3 = arith.constant 0 : index
    %c0_4 = arith.constant 0 : index
    %1 = vector.load %arg2[%c0_2, %c0_3, %c0_4] : memref<2x8x32xf32, #tpu.memory_space<vmem>>, vector<2x8x32xf32>
    %2 = arith.mulf %0, %1 : vector<2x8x32xf32>
    %3 = vector.shape_cast %2 : vector<2x8x32xf32> to vector<16x32xf32>
    %c0_5 = arith.constant 0 : index
    %c0_6 = arith.constant 0 : index
    %4 = vector.load %arg3[%c0_5, %c0_6] : memref<32x16xf32, #tpu.memory_space<vmem>>, vector<32x16xf32>
    %cst = arith.constant dense<0.000000e+00> : vector<16x16xf32>
    %5 = tpu.matmul %3, %4, %cst {dimension_numbers = #tpu.dot_dimension_numbers<[1], [0], [0], [1], [0, 0, 1, 1], [], []>} : vector<16x32xf32>, vector<32x16xf32>, vector<16x16xf32> -> vector<16x16xf32>
    %6 = math.tanh %5 : vector<16x16xf32>
    %c0_7 = arith.constant 0 : index
    %c0_8 = arith.constant 0 : index
    %7 = vector.load %arg4[%c0_7, %c0_8] : memref<1x16xf32, #tpu.memory_space<vmem>>, vector<1x16xf32>
    %8 = vector.broadcast %7 : vector<1x16xf32> to vector<16x16xf32>
    %9 = arith.mulf %6, %8 : vector<16x16xf32>
    %cst_9 = arith.constant dense<0.000000e+00> : vector<16xf32>
    %10 = vector.multi_reduction <add>, %9, %cst_9 [1] : vector<16x16xf32> to vector<16xf32>
    %11 = vector.shape_cast %10 : vector<16xf32> to vector<16x1xf32>
    %12 = vector.shape_cast %11 : vector<16x1xf32> to vector<2x8x1xf32>
    %cst_10 = arith.constant dense<0xFF800000> : vector<8x1xf32>
    %13 = vector.multi_reduction <maximumf>, %12, %cst_10 [0] : vector<2x8x1xf32> to vector<8x1xf32>
    %14 = vector.shape_cast %13 : vector<8x1xf32> to vector<1x8x1xf32>
    %15 = vector.broadcast %14 : vector<1x8x1xf32> to vector<2x8x1xf32>
    %16 = arith.subf %12, %15 : vector<2x8x1xf32>
    %17 = math.exp %16 : vector<2x8x1xf32>
    %cst_11 = arith.constant dense<0.000000e+00> : vector<8x1xf32>
    %18 = vector.multi_reduction <add>, %17, %cst_11 [0] : vector<2x8x1xf32> to vector<8x1xf32>
    %19 = vector.shape_cast %18 : vector<8x1xf32> to vector<1x8x1xf32>
    %20 = vector.broadcast %19 : vector<1x8x1xf32> to vector<2x8x1xf32>
    %21 = arith.divf %17, %20 : vector<2x8x1xf32>
    %22 = vector.broadcast %21 : vector<2x8x1xf32> to vector<2x8x32xf32>
    %23 = arith.mulf %0, %22 : vector<2x8x32xf32>
    %24 = vector.shape_cast %1 : vector<2x8x32xf32> to vector<16x32xf32>
    %25 = vector.shape_cast %23 : vector<2x8x32xf32> to vector<16x32xf32>
    %26 = arith.mulf %1, %23 : vector<2x8x32xf32>
    %27 = vector.shape_cast %26 : vector<2x8x32xf32> to vector<16x32xf32>
    %c0_12 = arith.constant 0 : index
    %c0_13 = arith.constant 0 : index
    %28 = vector.load %arg5[%c0_12, %c0_13] : memref<32x32xf32, #tpu.memory_space<vmem>>, vector<32x32xf32>
    %cst_14 = arith.constant dense<0.000000e+00> : vector<16x32xf32>
    %29 = tpu.matmul %24, %28, %cst_14 {dimension_numbers = #tpu.dot_dimension_numbers<[1], [0], [0], [1], [0, 0, 1, 1], [], []>} : vector<16x32xf32>, vector<32x32xf32>, vector<16x32xf32> -> vector<16x32xf32>
    %c0_15 = arith.constant 0 : index
    %c0_16 = arith.constant 0 : index
    %30 = vector.load %arg6[%c0_15, %c0_16] : memref<32x32xf32, #tpu.memory_space<vmem>>, vector<32x32xf32>
    %cst_17 = arith.constant dense<0.000000e+00> : vector<16x32xf32>
    %31 = tpu.matmul %25, %30, %cst_17 {dimension_numbers = #tpu.dot_dimension_numbers<[1], [0], [0], [1], [0, 0, 1, 1], [], []>} : vector<16x32xf32>, vector<32x32xf32>, vector<16x32xf32> -> vector<16x32xf32>
    %32 = arith.addf %29, %31 : vector<16x32xf32>
    %c0_18 = arith.constant 0 : index
    %c0_19 = arith.constant 0 : index
    %33 = vector.load %arg7[%c0_18, %c0_19] : memref<32x32xf32, #tpu.memory_space<vmem>>, vector<32x32xf32>
    %cst_20 = arith.constant dense<0.000000e+00> : vector<16x32xf32>
    %34 = tpu.matmul %27, %33, %cst_20 {dimension_numbers = #tpu.dot_dimension_numbers<[1], [0], [0], [1], [0, 0, 1, 1], [], []>} : vector<16x32xf32>, vector<32x32xf32>, vector<16x32xf32> -> vector<16x32xf32>
    %35 = arith.addf %32, %34 : vector<16x32xf32>
    %c0_21 = arith.constant 0 : index
    %c0_22 = arith.constant 0 : index
    %36 = vector.load %arg8[%c0_21, %c0_22] : memref<1x32xf32, #tpu.memory_space<vmem>>, vector<1x32xf32>
    %37 = vector.broadcast %36 : vector<1x32xf32> to vector<16x32xf32>
    %38 = arith.addf %35, %37 : vector<16x32xf32>
    %cst_23 = arith.constant 0.000000e+00 : f32
    %39 = vector.broadcast %cst_23 : f32 to vector<16x32xf32>
    %40 = arith.maximumf %38, %39 : vector<16x32xf32>
    %cst_24 = arith.constant dense<0.000000e+00> : vector<16xf32>
    %41 = vector.multi_reduction <add>, %40, %cst_24 [1] : vector<16x32xf32> to vector<16xf32>
    %42 = vector.shape_cast %41 : vector<16xf32> to vector<16x1xf32>
    %cst_25 = arith.constant 3.200000e+01 : f32
    %43 = vector.broadcast %cst_25 : f32 to vector<16x1xf32>
    %44 = arith.divf %42, %43 : vector<16x1xf32>
    %45 = vector.broadcast %44 : vector<16x1xf32> to vector<16x32xf32>
    %46 = arith.subf %40, %45 : vector<16x32xf32>
    %47 = arith.mulf %46, %46 : vector<16x32xf32>
    %cst_26 = arith.constant dense<0.000000e+00> : vector<16xf32>
    %48 = vector.multi_reduction <add>, %47, %cst_26 [1] : vector<16x32xf32> to vector<16xf32>
    %49 = vector.shape_cast %48 : vector<16xf32> to vector<16x1xf32>
    %cst_27 = arith.constant 3.200000e+01 : f32
    %50 = vector.broadcast %cst_27 : f32 to vector<16x1xf32>
    %51 = arith.divf %49, %50 : vector<16x1xf32>
    %52 = vector.broadcast %44 : vector<16x1xf32> to vector<16x32xf32>
    %53 = arith.subf %40, %52 : vector<16x32xf32>
    %cst_28 = arith.constant 9.99999974E-6 : f32
    %54 = vector.broadcast %cst_28 : f32 to vector<16x1xf32>
    %55 = arith.addf %51, %54 : vector<16x1xf32>
    %56 = math.rsqrt %55 : vector<16x1xf32>
    %57 = vector.broadcast %56 : vector<16x1xf32> to vector<16x32xf32>
    %58 = arith.mulf %53, %57 : vector<16x32xf32>
    %c0_29 = arith.constant 0 : index
    %c0_30 = arith.constant 0 : index
    %59 = vector.load %arg9[%c0_29, %c0_30] : memref<1x32xf32, #tpu.memory_space<vmem>>, vector<1x32xf32>
    %60 = vector.broadcast %59 : vector<1x32xf32> to vector<16x32xf32>
    %61 = arith.mulf %58, %60 : vector<16x32xf32>
    %c0_31 = arith.constant 0 : index
    %c0_32 = arith.constant 0 : index
    %62 = vector.load %arg10[%c0_31, %c0_32] : memref<1x32xf32, #tpu.memory_space<vmem>>, vector<1x32xf32>
    %63 = vector.broadcast %62 : vector<1x32xf32> to vector<16x32xf32>
    %64 = arith.addf %61, %63 : vector<16x32xf32>
    %65 = vector.shape_cast %64 : vector<16x32xf32> to vector<2x8x32xf32>
    %c0_33 = arith.constant 0 : index
    %c0_34 = arith.constant 0 : index
    %c0_35 = arith.constant 0 : index
    %66 = vector.load %arg11[%c0_33, %c0_34, %c0_35] : memref<2x8x32xf32, #tpu.memory_space<vmem>>, vector<2x8x32xf32>
    tpu.vector_store %arg11[%c0_33, %c0_34, %c0_35], %65 {strides = array<i32>} : memref<2x8x32xf32, #tpu.memory_space<vmem>>, vector<2x8x32xf32>,
    return
  }
  func.func @transform_0(%arg0: i32) -> (i32, i32, i32) {
    %c0_i32 = arith.constant 0 : i32
    %c0_i32_0 = arith.constant 0 : i32
    %c0_i32_1 = arith.constant 0 : i32
    return %c0_i32, %arg0, %c0_i32_0 : i32, i32, i32
  }
  func.func @transform_1(%arg0: i32) -> (i32, i32, i32) {
    %c0_i32 = arith.constant 0 : i32
    %c0_i32_0 = arith.constant 0 : i32
    %c0_i32_1 = arith.constant 0 : i32
    return %c0_i32, %arg0, %c0_i32_0 : i32, i32, i32
  }
  func.func @transform_2(%arg0: i32) -> (i32, i32) {
    %c0_i32 = arith.constant 0 : i32
    %c0_i32_0 = arith.constant 0 : i32
    %c0_i32_1 = arith.constant 0 : i32
    return %c0_i32, %c0_i32_0 : i32, i32
  }
  func.func @transform_3(%arg0: i32) -> (i32, i32) {
    %c0_i32 = arith.constant 0 : i32
    %c0_i32_0 = arith.constant 0 : i32
    %c0_i32_1 = arith.constant 0 : i32
    return %c0_i32, %c0_i32_0 : i32, i32
  }
  func.func @transform_4(%arg0: i32) -> (i32, i32) {
    %c0_i32 = arith.constant 0 : i32
    %c0_i32_0 = arith.constant 0 : i32
    %c0_i32_1 = arith.constant 0 : i32
    return %c0_i32, %c0_i32_0 : i32, i32
  }
  func.func @transform_5(%arg0: i32) -> (i32, i32) {
    %c0_i32 = arith.constant 0 : i32
    %c0_i32_0 = arith.constant 0 : i32
    %c0_i32_1 = arith.constant 0 : i32
    return %c0_i32, %c0_i32_0 : i32, i32
  }
  func.func @transform_6(%arg0: i32) -> (i32, i32) {
    %c0_i32 = arith.constant 0 : i32
    %c0_i32_0 = arith.constant 0 : i32
    %c0_i32_1 = arith.constant 0 : i32
    return %c0_i32, %c0_i32_0 : i32, i32
  }
  func.func @transform_7(%arg0: i32) -> (i32, i32) {
    %c0_i32 = arith.constant 0 : i32
    %c0_i32_0 = arith.constant 0 : i32
    %c0_i32_1 = arith.constant 0 : i32
    return %c0_i32, %c0_i32_0 : i32, i32
  }
  func.func @transform_8(%arg0: i32) -> (i32, i32) {
    %c0_i32 = arith.constant 0 : i32
    %c0_i32_0 = arith.constant 0 : i32
    %c0_i32_1 = arith.constant 0 : i32
    return %c0_i32, %c0_i32_0 : i32, i32
  }
  func.func @transform_9(%arg0: i32) -> (i32, i32) {
    %c0_i32 = arith.constant 0 : i32
    %c0_i32_0 = arith.constant 0 : i32
    %c0_i32_1 = arith.constant 0 : i32
    return %c0_i32, %c0_i32_0 : i32, i32
  }
  func.func @transform_10(%arg0: i32) -> (i32, i32, i32) {
    %c0_i32 = arith.constant 0 : i32
    %c0_i32_0 = arith.constant 0 : i32
    %c0_i32_1 = arith.constant 0 : i32
    return %c0_i32, %arg0, %c0_i32_0 : i32, i32, i32
  }
}

</mosaic_0001>

<bundles_post_ra>
// kernel: tpu_custom_call.1
= control target key start
LH: loop header
LB: loop body
LE: loop exit
PB: predicated region body
PF: predicated region fallthrough
CT: control target
= control target key end

     0   :  { %15 = vsyncpa [#allocation3], 0  ;;  %s973_s0 = inlined_call_operand.hbm [shape: f32[2,8,32], index: 0, kind: input, shape index: {}]   ;;  %s974_s1 = inlined_call_operand.hbm [shape: f32[2,8,32], index: 1, kind: input, shape index: {}]   ;;  %s975_s2 = inlined_call_operand.vmem [shape: f32[32,16], index: 2, kind: input, shape index: {}]   ;;  %s976_s3 = inlined_call_operand.vmem [shape: f32[1,16], index: 3, kind: input, shape index: {}]   ;;  %s977_s4 = inlined_call_operand.vmem [shape: f32[32,32], index: 4, kind: input, shape index: {}]   ;;  %s978_s5 = inlined_call_operand.vmem [shape: f32[32,32], index: 5, kind: input, shape index: {}]   ;;  %s979_s6 = inlined_call_operand.hbm [shape: f32[32,32], index: 6, kind: input, shape index: {}]   ;;  %s980_s7 = inlined_call_operand.vmem [shape: f32[1,32], index: 7, kind: input, shape index: {}]   ;;  %s981_s8 = inlined_call_operand.vmem [shape: f32[1,32], index: 8, kind: input, shape index: {}]   ;;  %s982_s9 = inlined_call_operand.vmem [shape: f32[1,32], index: 9, kind: input, shape index: {}]   ;;  %s983_s10 = inlined_call_operand.hbm [shape: f32[2,8,32], index: 10, kind: output, shape index: {}]  }
   0x1   :  { %16 = vsyncpa [#allocation6], 0 }
   0x2   :  { %17 = vsyncpa [#allocation4], 0  ;;  %s765_s13 = smov [#allocation5]   ;;  %s766_s15 = smov [#allocation2]  }
   0x3   :  { %s35_s14 = sshll.u32 %s765_s13, 4  ;;  %s23_s16 = sshll.u32 %s766_s15, 4  ;;  %s36_s14 = int_to_ptr.vmem [resolvable:$true] %s35_s14  ;;  %s826_s16 = int_to_ptr.vmem [resolvable:$true] %s23_s16 }
   0x4   :  { %s671_s19 = scalar_lea.hbm %s974_s1, 256 }
   0x5   :  { %p672_p0 = scmp.ne.s32.totalorder %s974_s1, %s671_s19  ;;  %p675_p1 = scmp.lt.u32.totalorder %s671_s19, %s974_s1 }
   0x7   :  { %p677_p2 = pnand %p675_p1, %p672_p0 }
   0x9   :  { %680 = shalt.err (!%p677_p2)
}
   0xa   :  { %s681_s24 = scalar_lea.vmem %s36_s14, 256  ;;  %p686_p4 = scmp.lt.s32.totalorder %s36_s14, %s36_s14 }
   0xb   :  { %p682_p3 = scmp.ne.s32.totalorder %s36_s14, %s681_s24  ;;  %p687_p5 = scmp.lt.s32.totalorder %s681_s24, %s681_s24 }
   0xd   :  { %p688_p6 = por %p687_p5, %p686_p4 }
   0xf   :  { %p689_p7 = pnand %p688_p6, %p682_p3 }
  0x11   :  { %692 = shalt.err (!%p689_p7)
}
  0x12   :  { %s767_s25 = smov 128   ;;  %s768_s26 = smov 8  }
  0x13   :  { %41 = dma.hbm_to_vmem [thread:$0]  %s974_s1, 256, %s36_s14, [#allocation6], %s767_s25, %s767_s25, %s768_s26  }
  0x14   :  { %s693_s11 = scalar_lea.hbm %s973_s0, 256 }
  0x15   :  { %p694_p8 = scmp.ne.s32.totalorder %s973_s0, %s693_s11  ;;  %p697_p9 = scmp.lt.u32.totalorder %s693_s11, %s973_s0 }
  0x17   :  { %p699_p10 = pnand %p697_p9, %p694_p8 }
  0x19   :  { %702 = shalt.err (!%p699_p10)
}
  0x1a   :  { %s703_s18 = scalar_lea.vmem %s826_s16, 256  ;;  %p708_p12 = scmp.lt.s32.totalorder %s826_s16, %s826_s16 }
  0x1b   :  { %p704_p11 = scmp.ne.s32.totalorder %s826_s16, %s703_s18  ;;  %p709_p13 = scmp.lt.s32.totalorder %s703_s18, %s703_s18 }
  0x1d   :  { %p710_p0 = por %p709_p13, %p708_p12 }
  0x1f   :  { %p711_p1 = pnand %p710_p0, %p704_p11 }
  0x21   :  { %714 = shalt.err (!%p711_p1)
}
  0x22   :  { %29 = dma.hbm_to_vmem [thread:$0]  %s973_s0, 256, %s826_s16, [#allocation3], %s767_s25, %s767_s25, %s768_s26  }
  0x23   :  { %s769_s19 = smov [#allocation7]   ;;  %s715_s23 = scalar_lea.hbm %s979_s6, 512 }
  0x24   :  { %s55_s20 = sshll.u32 %s769_s19, 4  ;;  %p716_p2 = scmp.ne.s32.totalorder %s979_s6, %s715_s23  ;;  %s56_s20 = int_to_ptr.vmem [resolvable:$true] %s55_s20 }
  0x25   :  { %p719_p3 = scmp.lt.u32.totalorder %s715_s23, %s979_s6 }
  0x27   :  { %p721_p4 = pnand %p719_p3, %p716_p2 }
  0x29   :  { %724 = shalt.err (!%p721_p4)
}
  0x2a   :  { %s725_s30 = scalar_lea.vmem %s56_s20, 512  ;;  %p730_p6 = scmp.lt.s32.totalorder %s56_s20, %s56_s20 }
  0x2b   :  { %p726_p5 = scmp.ne.s32.totalorder %s56_s20, %s725_s30  ;;  %p731_p7 = scmp.lt.s32.totalorder %s725_s30, %s725_s30 }
  0x2d   :  { %p732_p8 = por %p731_p7, %p730_p6 }
  0x2f   :  { %p733_p9 = pnand %p732_p8, %p726_p5 }
  0x31   :  { %736 = shalt.err (!%p733_p9)
}
  0x32   :  { %61 = dma.hbm_to_vmem [thread:$0]  %s979_s6, 512, %s56_s20, [#allocation6], %s767_s25, %s767_s25, %s768_s26  }
  0x33   :  { %759 = dma.done.wait [#allocation3], 256  }
  0x34   :  { %760 = vsyncadd [#allocation3], 4294967040 }
  0x35   :  { %761 = dma.done.wait [#allocation6], 768  }
  0x36   :  { %762 = vsyncadd [#allocation6], 4294966528  ;;  %v83_v0 = vld [vmem:[%s975_s2] sm:$0xff]  ;;  %v84_v1 = vld [vmem:[%s975_s2 + $0x8] sm:$0xff]  ;;  %vm87_vm0 = vcmask 261120   ;;  %vm180_vm1 = vcmask 130048  }
  0x37   :  { %v85_v2 = vld [vmem:[%s975_s2 + $0x10] sm:$0xff]  ;;  %v615_v3 = vpack.c.bf16 %v84_v1, %v83_v0  ;;  %v86_v4 = vld [vmem:[%s975_s2 + $0x18] sm:$0xff]  ;;  %v890_v5 = vld [vmem:[#allocation2] sm:$0xff]  ;;  %s770_s1 = smov [#allocation8]  }
  0x38   :  { %v892_v6 = vld [vmem:[#allocation5] sm:$0xff]  ;;  %v619_v7 = vpack.c.bf16 %v86_v4, %v85_v2  ;;  %v899_v9 = vld [vmem:[#allocation2 + $0x8] sm:$0xff]  ;;  %v901_v10 = vld [vmem:[#allocation5 + $0x8] sm:$0xff]  ;;  %s522_s14 = sshll.u32 %s770_s1, 4  ;;  %s523_s14 = int_to_ptr.vmem [resolvable:$true] %s522_s14 }
  0x39   :  { %v81_v8 = vmul.f32 %v892_v6, %v890_v5  ;;  %601 = vmatprep.mubr.msk.f32.mxu1 %vm87_vm0, %v892_v6  ;;  %616 = vmatprep.subr.bf16.mxu0 %v615_v3  ;;  %v82_v11 = vmul.f32 %v901_v10, %v899_v9  ;;  %v537_v14 = vld [vmem:[%s976_s3] ss:$0 sm:$0xff]  ;;  %v203_v22 = vld [vmem:[%s977_s4 + $0x8] sm:$0xff]  ;;  %v204_v24 = vld [vmem:[%s977_s4 + $0x10] sm:$0xff]  ;;  %s737_s2 = scalar_lea.vmem %s523_s14, 256  ;;  %p742_p11 = scmp.lt.s32.totalorder %s523_s14, %s523_s14 }
  0x3a   :  { %618 = vmatpush3.bf16.msra.mxu0 %v615_v3  ;;  %v202_v21 = vld [vmem:[%s977_s4] sm:$0xff]  ;;  %v205_v25 = vld [vmem:[%s977_s4 + $0x18] sm:$0xff]  ;;  %v207_v28 = vld [vmem:[%s978_s5 + $0x8] sm:$0xff]  ;;  %p738_p10 = scmp.ne.s32.totalorder %s523_s14, %s737_s2  ;;  %p743_p12 = scmp.lt.s32.totalorder %s737_s2, %s737_s2 }
  0x3b   :  { %579 = vmatprep.mubr.msk.f32.mxu0 %vm87_vm0, %v81_v8  ;;  %620 = vmatprep.subr.bf16.mxu0 %v619_v7  ;;  %v631_v23 = vpack.c.bf16 %v203_v22, %v202_v21  ;;  %v635_v26 = vpack.c.bf16 %v205_v25, %v204_v24  ;;  %v206_v27 = vld [vmem:[%s978_s5] sm:$0xff]  ;;  %v373_v31 = vld [vmem:[#allocation7 + $0x8] sm:$0xff]  ;;  %v208_v33 = vld [vmem:[%s978_s5 + $0x10] sm:$0xff] }
  0x3c   :  { %v623_v29 = vpack.c.bf16 %v207_v28, %v206_v27  ;;  %v372_v30 = vld [vmem:[#allocation7] sm:$0xff]  ;;  %v209_v34 = vld [vmem:[%s978_s5 + $0x18] sm:$0xff]  ;;  %v374_v36 = vld [vmem:[#allocation7 + $0x10] sm:$0xff]  ;;  %p744_p13 = por %p743_p12, %p742_p11 }
  0x3d   :  { %632 = vmatprep.subr.bf16.mxu1 %v631_v23  ;;  %v639_v32 = vpack.c.bf16 %v373_v31, %v372_v30  ;;  %v627_v35 = vpack.c.bf16 %v209_v34, %v208_v33  ;;  %v375_v37 = vld [vmem:[#allocation7 + $0x18] sm:$0xff]  ;;  %v544_v60 = vld [vmem:[%s980_s7] ss:$0 sm:$0xff] }
  0x3e   :  { %622 = vmatpush3.bf16.msra.mxu0 %v619_v7  ;;  %634 = vmatpush3.bf16.msra.mxu1 %v631_v23  ;;  %v643_v38 = vpack.c.bf16 %v375_v37, %v374_v36  ;;  %v545_v22 = vld [vmem:[%s981_s8] ss:$0 sm:$0xff]  ;;  %p745_p0 = pnand %p744_p13, %p738_p10 }
  0x3f   :  { %636 = vmatprep.subr.bf16.mxu1 %v635_v26  ;;  %624 = vmatprep.subr.bf16.mxu0 %v623_v29  ;;  %v546_v24 = vld [vmem:[%s982_s9] ss:$0 sm:$0xff] }
  0x41   :  { %580 = vmatmul.mubr.msk.f32.vlgmr.msra.gmra.mrb[0].mxu0 %vm87_vm0, %v82_v11 }
  0x42   :  { %638 = vmatpush3.bf16.msra.mxu1 %v635_v26  ;;  %626 = vmatpush3.bf16.msra.mxu0 %v623_v29 }
  0x43   :  { %640 = vmatprep.subr.bf16.mxu1 %v639_v32  ;;  %628 = vmatprep.subr.bf16.mxu0 %v627_v35 }
  0x45   :  { %602 = vmatmul.mubr.msk.f32.vlgmr.msra.gmra.mrb[0].mxu1 %vm87_vm0, %v901_v10 }
  0x46   :  { %642 = vmatpush3.bf16.msra.mxu1 %v639_v32  ;;  %630 = vmatpush3.bf16.msra.mxu0 %v627_v35 }
  0x47   :  { %644 = vmatprep.subr.bf16.mxu1 %v643_v38 }
  0x4a   :  { %646 = vmatpush3.bf16.msra.mxu1 %v643_v38 }
 0x114   :  { %v581_v12 = vpop.f32.mrb[0].mxu0 }
 0x115   :  { %657 = vtanh.f32 %v581_v12  ;;  %v160_v13 = vpop.f32.mrb[1].mxu0 }
 0x116   :  { %659 = vtanh.f32 %v160_v13 }
 0x11f   :  { %v658_v15 = vpop.eup %657 }
 0x120   :  { %v660_v16 = vpop.eup %659  ;;  %v179_v19 = vmul.f32 %v658_v15, %v537_v14 }
 0x121   :  { %v178_v17 = vmul.f32 %v660_v16, %v537_v14 }
 0x122   :  { %v184_v20 = vsel %vm180_vm1, %v179_v19, 0.0 }
 0x123   :  { %v181_v18 = vsel %vm180_vm1, %v178_v17, 0.0 }
 0x124   :  { %182 = vadd.xlane.f32.xlu0 %v181_v18 }
 0x128   :  { %185 = vadd.xlane.f32.xlu0 %v184_v20 }
 0x1b1   :  { %v183_v39 = vpop.xlane.xlu0 %182 }
 0x1b5   :  { %v186_v40 = vpop.xlane.xlu0 %185 }
 0x1b6   :  { %v187_v41 = vmax.f32 %v183_v39, %v186_v40 }
 0x1b8   :  { %v188_v42 = vsub.f32 %v183_v39, %v187_v41  ;;  %v189_v43 = vsub.f32 %v186_v40, %v187_v41 }
 0x1ba   :  { %v190_v44 = vmul.f32 1.442695, %v188_v42  ;;  %v192_v45 = vmul.f32 1.442695, %v189_v43 }
 0x1bc   :  { %661 = vpow2.f32 %v190_v44 }
 0x1bd   :  { %663 = vpow2.f32 %v192_v45 }
 0x1c6   :  { %v662_v46 = vpop.eup %661 }
 0x1c7   :  { %v664_v47 = vpop.eup %663 }
 0x1c8   :  { %v194_v48 = vadd.f32 %v664_v47, %v662_v46 }
 0x1ca   :  { %665 = vrcp.f32 %v194_v48 }
 0x1d4   :  { %v666_v49 = vpop.eup %665 }
 0x1d5   :  { %v197_v50 = vmul.f32 %v666_v49, %v664_v47  ;;  %v196_v51 = vmul.f32 %v666_v49, %v662_v46 }
 0x1d7   :  { %v198_v52 = vmul.f32 %v196_v51, %v890_v5  ;;  %v199_v53 = vmul.f32 %v197_v50, %v899_v9 }
 0x1d9   :  { %590 = vmatprep.mubr.msk.f32.mxu0 %vm87_vm0, %v198_v52  ;;  %v200_v54 = vmul.f32 %v198_v52, %v892_v6  ;;  %v201_v55 = vmul.f32 %v199_v53, %v901_v10 }
 0x1da   :  { %591 = vmatmul.mubr.msk.f32.vlgmr.msra.gmra.mrb[2].mxu0 %vm87_vm0, %v199_v53 }
 0x1db   :  { %612 = vmatprep.mubr.msk.f32.mxu1 %vm87_vm0, %v200_v54 }
 0x1dc   :  { %613 = vmatmul.mubr.msk.f32.vlgmr.msra.gmra.mrb[0].mxu1 %vm87_vm0, %v201_v55 }
 0x2ad   :  { %v592_v56 = vpop.f32.mrb[2].mxu0 }
 0x2ae   :  { %v282_v57 = vpop.f32.mrb[3].mxu0 }
 0x2af   :  { %v614_v58 = vpop.f32.mrb[0].mxu1 }
 0x2b0   :  { %v647_v59 = vadd.f32 %v614_v58, %v592_v56  ;;  %v448_v61 = vpop.f32.mrb[1].mxu1 }
 0x2b1   :  { %v648_v62 = vadd.f32 %v448_v61, %v282_v57 }
 0x2b2   :  { %v467_v63 = vadd.f32 %v647_v59, %v544_v60 }
 0x2b3   :  { %v466_v0 = vadd.f32 %v648_v62, %v544_v60 }
 0x2b4   :  { %v469_v3 = vmax.f32 %v467_v63, 0.0 }
 0x2b5   :  { %v468_v1 = vmax.f32 %v466_v0, 0.0 }
 0x2b6   :  { %v473_v4 = vsel %vm87_vm0, %v469_v3, 0.0 }
 0x2b7   :  { %v470_v2 = vsel %vm87_vm0, %v468_v1, 0.0 }
 0x2b8   :  { %471 = vadd.xlane.f32.xlu1 %v470_v2 }
 0x2bc   :  { %474 = vadd.xlane.f32.xlu1 %v473_v4 }
 0x345   :  { %v472_v5 = vpop.xlane.xlu1 %471 }
 0x346   :  { %v477_v6 = vmul.f32 0.03125, %v472_v5 }
 0x348   :  { %v479_v7 = vsub.f32 %v468_v1, %v477_v6 }
 0x349   :  { %v475_v8 = vpop.xlane.xlu1 %474 }
 0x34a   :  { %v478_v9 = vmul.f32 0.03125, %v475_v8  ;;  %v481_v10 = vmul.f32 %v479_v7, %v479_v7 }
 0x34c   :  { %v480_v11 = vsub.f32 %v469_v3, %v478_v9  ;;  %v483_v12 = vsel %vm87_vm0, %v481_v10, 0.0 }
 0x34d   :  { %484 = vadd.xlane.f32.xlu0 %v483_v12 }
 0x34e   :  { %v482_v13 = vmul.f32 %v480_v11, %v480_v11 }
 0x350   :  { %v486_v14 = vsel %vm87_vm0, %v482_v13, 0.0 }
 0x351   :  { %487 = vadd.xlane.f32.xlu1 %v486_v14 }
 0x3da   :  { %v485_v15 = vpop.xlane.xlu0 %484 }
 0x3db   :  { %v489_v16 = vmul.f32 0.03125, %v485_v15 }
 0x3dd   :  { %v491_v17 = vadd.f32 1e-05, %v489_v16 }
 0x3de   :  { %v488_v18 = vpop.xlane.xlu1 %487 }
 0x3df   :  { %667 = vrsqrt.f32 %v491_v17  ;;  %v490_v19 = vmul.f32 0.03125, %v488_v18 }
 0x3e1   :  { %v492_v20 = vadd.f32 1e-05, %v490_v19 }
 0x3e3   :  { %669 = vrsqrt.f32 %v492_v20 }
 0x3e9   :  { %v668_v21 = vpop.eup %667 }
 0x3ea   :  { %v495_v23 = vmul.f32 %v668_v21, %v479_v7 }
 0x3ec   :  { %v504_v25 = vmul.f32 %v545_v22, %v495_v23 }
 0x3ed   :  { %v670_v26 = vpop.eup %669 }
 0x3ee   :  { %v496_v27 = vmul.f32 %v670_v26, %v480_v11  ;;  %v513_v28 = vadd.f32 %v546_v24, %v504_v25 }
 0x3f0   :  { %v505_v29 = vmul.f32 %v545_v22, %v496_v27  ;;  %515 = vst.msk [vmem:[#allocation8] sm:$0xff] %vm87_vm0, %v513_v28 }
 0x3f2   :  { %v514_v30 = vadd.f32 %v546_v24, %v505_v29 }
 0x3f4   :  { %516 = vst.msk [vmem:[#allocation8 + $0x8] sm:$0xff] %vm87_vm0, %v514_v30 }
 0x3f5   :  { %748 = shalt.err (!%p745_p0)
}
 0x3f6   :  { %s749_s6 = scalar_lea.hbm %s983_s10, 256 }
 0x3f7   :  { %p750_p1 = scmp.ne.s32.totalorder %s983_s10, %s749_s6  ;;  %p753_p2 = scmp.lt.u32.totalorder %s749_s6, %s983_s10 }
 0x3f9   :  { %p755_p3 = pnand %p753_p2, %p750_p1 }
 0x3fb   :  { %758 = shalt.err (!%p755_p3)
}
 0x3fc   :  { %528 = dma.vmem_to_hbm [thread:$0]  %s523_s14, 256, %s983_s10, [#allocation4], %s767_s25, %s767_s25, %s768_s26  }
 0x3fd   :  { %763 = dma.done.wait [#allocation4], 256  }
 0x3fe   :  { %764 = vsyncadd [#allocation4], 4294967040 }
 0x3ff   :  { %532 = vsyncpa [#allocation3], 1 }
 0x400   :  { %533 = vsyncpa [#allocation6], 1 }
 0x401   :  { %534 = vsyncpa [#allocation4], 1 }

</bundles_post_ra>
